<compile_context>
chip_gen: v6e
topology: v6e:2x2x1
jax: 0.10.0
libtpu: 0.0.40
codegen_flags: <defaults>
</compile_context>

<pallas_src>
import jax
import jax.numpy as jnp
from jax.experimental import pallas as pl
from jax.experimental.pallas import tpu as pltpu

# CartPole-v1: observation dim 4, action dim 2 (gym not needed in-script).
N_STATES = 4
N_ACTIONS = 2
HIDDEN = 50

# Lane-aligned padded hidden width (128-lane vregs).
HIDDEN_PAD = 128

# Cap on rows per tile so VMEM stays tiny even for huge replay batches.
_MAX_TM = 4096


def _round_up(n, m):
    return ((n + m - 1) // m) * m


def _cdiv(a, b):
    return (a + b - 1) // b


def _default_num_tiles():
    """1 grid step on single-TC chips (v5e/v6e); 2 on v7x (one tile per TensorCore)."""
    try:
        kind = jax.devices()[0].device_kind.lower()
    except Exception:
        return 1
    return 2 if "v7" in kind else 1


def _mlp_kernel(x_ref, w1_ref, b1_ref, w2_ref, b2_ref, o_ref):
    # fc1 + relu  (MXU matmul with f32 accumulation, ReLU on the VPU).
    h = jnp.dot(x_ref[...], w1_ref[...], preferred_element_type=jnp.float32)
    h = jnp.maximum(h + b1_ref[...], 0.0)          # (TM, 128) + (1, 128) broadcast
    # out layer: (TM, 128) @ (128, N_ACTIONS) -> store only the real action columns.
    y = jnp.dot(h, w2_ref[...], preferred_element_type=jnp.float32)
    o_ref[...] = y + b2_ref[...]                   # (TM, 2) + (1, 2) broadcast


@jax.jit
def net_forward(x, w1p, b1p, w2p, b2p):
    """x: (B, N_STATES) f32.  Padded params from pad_params().
    Returns actions_value: (B, N_ACTIONS) f32 — same semantics as torch Net.forward."""
    B = x.shape[0]
    num_tiles = _default_num_tiles()               # trace-time Python constant
    tm = min(_round_up(_cdiv(B, num_tiles), 8), _MAX_TM)
    grid = (_cdiv(B, tm),)

    return pl.pallas_call(
        _mlp_kernel,
        out_shape=jax.ShapeDtypeStruct((B, N_ACTIONS), jnp.float32),
        grid_spec=pltpu.PrefetchScalarGridSpec(
            num_scalar_prefetch=0,
            grid=grid,
            in_specs=[
                pl.BlockSpec((tm, N_STATES), lambda i: (i, 0)),          # x tile
                pl.BlockSpec((N_STATES, HIDDEN_PAD), lambda i: (0, 0)),  # W1 (resident)
                pl.BlockSpec((1, HIDDEN_PAD), lambda i: (0, 0)),         # b1
                pl.BlockSpec((HIDDEN_PAD, N_ACTIONS), lambda i: (0, 0)),  # W2 (resident)
                pl.BlockSpec((1, N_ACTIONS), lambda i: (0, 0)),          # b2
            ],
            out_specs=pl.BlockSpec((tm, N_ACTIONS), lambda i: (i, 0)),
        ),
        compiler_params=pltpu.CompilerParams(
            dimension_semantics=("parallel",),     # 2 tiles -> 2 TCs on v7x
        ),
    )(x, w1p, b1p, w2p, b2p)


def init_params(key):
    """Deterministic init mimicking PyTorch nn.Linear default (uniform +/- 1/sqrt(fan_in)).
    Weights stored as (in, out): transposed relative to torch's (out, in)."""
    k1, k2, k3, k4 = jax.random.split(key, 4)
    bound1 = 1.0 / jnp.sqrt(jnp.float32(N_STATES))
    bound2 = 1.0 / jnp.sqrt(jnp.float32(HIDDEN))
    w1 = jax.random.uniform(k1, (N_STATES, HIDDEN), jnp.float32, -bound1, bound1)
    b1 = jax.random.uniform(k2, (1, HIDDEN), jnp.float32, -bound1, bound1)
    w2 = jax.random.uniform(k3, (HIDDEN, N_ACTIONS), jnp.float32, -bound2, bound2)
    b2 = jax.random.uniform(k4, (1, N_ACTIONS), jnp.float32, -bound2, bound2)
    return w1, b1, w2, b2


def pad_params(w1, b1, w2, b2):
    """Zero-pad the hidden axis once, outside the kernel.  Exactness: padded hidden
    units get 0 pre-activation -> relu 0 -> multiplied by zero W2 rows -> no effect."""
    w1p = jnp.zeros((N_STATES, HIDDEN_PAD), jnp.float32).at[:, :HIDDEN].set(w1)
    b1p = jnp.zeros((1, HIDDEN_PAD), jnp.float32).at[:, :HIDDEN].set(b1)
    w2p = jnp.zeros((HIDDEN_PAD, N_ACTIONS), jnp.float32).at[:HIDDEN, :].set(w2)
    b2p = b2.astype(jnp.float32)                   # (1, N_ACTIONS), no padding needed
    return w1p, b1p, w2p, b2p


if __name__ == "__main__":
    key = jax.random.PRNGKey(0)
    pkey, xkey = jax.random.split(key)
    w1, b1, w2, b2 = init_params(pkey)
    w1p, b1p, w2p, b2p = pad_params(w1, b1, w2, b2)

    # Batched inference (a DQN replay batch of CartPole states).
    B = 512
    x = jax.random.normal(xkey, (B, N_STATES), jnp.float32)

    actions_value = net_forward(x, w1p, b1p, w2p, b2p)
    jax.block_until_ready(actions_value)

    # Correctness check against pure-JAX reference with the ORIGINAL (unpadded) params.
    ref = jnp.maximum(x @ w1 + b1, 0.0) @ w2 + b2
    assert actions_value.shape == (B, N_ACTIONS)
    assert jnp.allclose(actions_value, ref, atol=1e-5, rtol=1e-5)

    # Tiny batch (single env-step style), single grid point.
    x_small = x[:8]
    av_small = net_forward(x_small, w1p, b1p, w2p, b2p)
    jax.block_until_ready(av_small)
    assert av_small.shape == (8, N_ACTIONS)
    assert jnp.allclose(av_small, ref[:8], atol=1e-5, rtol=1e-5)

    # Ragged batch (not a multiple of 8): exercises the partial-final-block path
    # that replaced the wrapper-side jnp.pad.
    x_ragged = x[:37]
    av_ragged = net_forward(x_ragged, w1p, b1p, w2p, b2p)
    jax.block_until_ready(av_ragged)
    assert av_ragged.shape == (37, N_ACTIONS)
    assert jnp.allclose(av_ragged, ref[:37], atol=1e-5, rtol=1e-5)

    print("KERNEL_OK")
</pallas_src>

<mosaic_0001>
module attributes {stable_mosaic.version = 11 : i64} {
  func.func @_mlp_kernel(%arg0: i32, %arg1: memref<512x4xf32, #tpu.memory_space<vmem>>, %arg2: memref<4x128xf32, #tpu.memory_space<vmem>>, %arg3: memref<1x128xf32, #tpu.memory_space<vmem>>, %arg4: memref<128x2xf32, #tpu.memory_space<vmem>>, %arg5: memref<1x2xf32, #tpu.memory_space<vmem>>, %arg6: memref<512x2xf32, #tpu.memory_space<vmem>>) attributes {dimension_semantics = [#tpu.dimension_semantics<parallel>], iteration_bounds = array<i64: 1>, scalar_prefetch = 0 : i64, scratch_operands = 0 : i64, tpu.core_type = #tpu.core_type<tc>, window_params = [{transform_indices = @transform_0, window_bounds = array<i64: 512, 4>}, {pipeline_mode = #tpu.pipeline_mode<synchronous>, transform_indices = @transform_1, window_bounds = array<i64: 4, 128>}, {pipeline_mode = #tpu.pipeline_mode<synchronous>, transform_indices = @transform_2, window_bounds = array<i64: 1, 128>}, {pipeline_mode = #tpu.pipeline_mode<synchronous>, transform_indices = @transform_3, window_bounds = array<i64: 128, 2>}, {pipeline_mode = #tpu.pipeline_mode<synchronous>, transform_indices = @transform_4, window_bounds = array<i64: 1, 2>}, {transform_indices = @transform_5, window_bounds = array<i64: 512, 2>}]} {
    %c0 = arith.constant 0 : index
    %c0_0 = arith.constant 0 : index
    %0 = vector.load %arg1[%c0, %c0_0] : memref<512x4xf32, #tpu.memory_space<vmem>>, vector<512x4xf32>
    %c0_1 = arith.constant 0 : index
    %c0_2 = arith.constant 0 : index
    %1 = vector.load %arg2[%c0_1, %c0_2] : memref<4x128xf32, #tpu.memory_space<vmem>>, vector<4x128xf32>
    %cst = arith.constant dense<0.000000e+00> : vector<512x128xf32>
    %2 = tpu.matmul %0, %1, %cst {dimension_numbers = #tpu.dot_dimension_numbers<[1], [0], [0], [1], [0, 0, 1, 1], [], []>} : vector<512x4xf32>, vector<4x128xf32>, vector<512x128xf32> -> vector<512x128xf32>
    %c0_3 = arith.constant 0 : index
    %c0_4 = arith.constant 0 : index
    %3 = vector.load %arg3[%c0_3, %c0_4] : memref<1x128xf32, #tpu.memory_space<vmem>>, vector<1x128xf32>
    %4 = vector.broadcast %3 : vector<1x128xf32> to vector<512x128xf32>
    %5 = arith.addf %2, %4 : vector<512x128xf32>
    %cst_5 = arith.constant 0.000000e+00 : f32
    %6 = vector.broadcast %cst_5 : f32 to vector<512x128xf32>
    %7 = arith.maximumf %5, %6 : vector<512x128xf32>
    %c0_6 = arith.constant 0 : index
    %c0_7 = arith.constant 0 : index
    %8 = vector.load %arg4[%c0_6, %c0_7] : memref<128x2xf32, #tpu.memory_space<vmem>>, vector<128x2xf32>
    %cst_8 = arith.constant dense<0.000000e+00> : vector<512x2xf32>
    %9 = tpu.matmul %7, %8, %cst_8 {dimension_numbers = #tpu.dot_dimension_numbers<[1], [0], [0], [1], [0, 0, 1, 1], [], []>} : vector<512x128xf32>, vector<128x2xf32>, vector<512x2xf32> -> vector<512x2xf32>
    %c0_9 = arith.constant 0 : index
    %c0_10 = arith.constant 0 : index
    %10 = vector.load %arg5[%c0_9, %c0_10] : memref<1x2xf32, #tpu.memory_space<vmem>>, vector<1x2xf32>
    %11 = vector.broadcast %10 : vector<1x2xf32> to vector<512x2xf32>
    %12 = arith.addf %9, %11 : vector<512x2xf32>
    %c0_11 = arith.constant 0 : index
    %c0_12 = arith.constant 0 : index
    %13 = vector.load %arg6[%c0_11, %c0_12] : memref<512x2xf32, #tpu.memory_space<vmem>>, vector<512x2xf32>
    tpu.vector_store %arg6[%c0_11, %c0_12], %12 {strides = array<i32>} : memref<512x2xf32, #tpu.memory_space<vmem>>, vector<512x2xf32>,
    return
  }
  func.func @transform_0(%arg0: i32) -> (i32, i32) {
    %c0_i32 = arith.constant 0 : i32
    %c0_i32_0 = arith.constant 0 : i32
    return %arg0, %c0_i32 : i32, i32
  }
  func.func @transform_1(%arg0: i32) -> (i32, i32) {
    %c0_i32 = arith.constant 0 : i32
    %c0_i32_0 = arith.constant 0 : i32
    %c0_i32_1 = arith.constant 0 : i32
    return %c0_i32, %c0_i32_0 : i32, i32
  }
  func.func @transform_2(%arg0: i32) -> (i32, i32) {
    %c0_i32 = arith.constant 0 : i32
    %c0_i32_0 = arith.constant 0 : i32
    %c0_i32_1 = arith.constant 0 : i32
    return %c0_i32, %c0_i32_0 : i32, i32
  }
  func.func @transform_3(%arg0: i32) -> (i32, i32) {
    %c0_i32 = arith.constant 0 : i32
    %c0_i32_0 = arith.constant 0 : i32
    %c0_i32_1 = arith.constant 0 : i32
    return %c0_i32, %c0_i32_0 : i32, i32
  }
  func.func @transform_4(%arg0: i32) -> (i32, i32) {
    %c0_i32 = arith.constant 0 : i32
    %c0_i32_0 = arith.constant 0 : i32
    %c0_i32_1 = arith.constant 0 : i32
    return %c0_i32, %c0_i32_0 : i32, i32
  }
  func.func @transform_5(%arg0: i32) -> (i32, i32) {
    %c0_i32 = arith.constant 0 : i32
    %c0_i32_0 = arith.constant 0 : i32
    return %arg0, %c0_i32 : i32, i32
  }
}

</mosaic_0001>

<bundles_post_ra>
// kernel: net_forward.1
= control target key start
LH: loop header
LB: loop body
LE: loop exit
PB: predicated region body
PF: predicated region fallthrough
CT: control target
= control target key end

     0   :  { %vm285_vm0 = vcmask 1043456   ;;  %vm92_vm1 = vcmask 31744   ;;  %vm1146_vm2 = vcmask 15360   ;;  %s2416_s1 = inlined_call_operand.vmem [shape: f32[4,128], index: 1, kind: input, shape index: {}]   ;;  %s2417_s0 = inlined_call_operand.vmem [shape: f32[512,4], index: 0, kind: input, shape index: {}]   ;;  %s2418_s3 = inlined_call_operand.vmem [shape: f32[128,2], index: 3, kind: input, shape index: {}]   ;;  %s2419_s2 = inlined_call_operand.vmem [shape: f32[1,128], index: 2, kind: input, shape index: {}]   ;;  %s2420_s4 = inlined_call_operand.vmem [shape: f32[1,2], index: 4, kind: input, shape index: {}]   ;;  %s2421_s5 = inlined_call_operand.vmem [shape: f32[512,2], index: 5, kind: output, shape index: {}]  }
   0x1   :  { %v84_v0 = vld [vmem:[%s2416_s1] sm:$0xf]  ;;  %v21_v2 = vld [vmem:[%s2417_s0 + $0x8] sm:$0xff]  ;;  %v22_v3 = vld [vmem:[%s2417_s0 + $0x10] sm:$0xff] }
   0x2   :  { %v20_v1 = vld [vmem:[%s2417_s0] sm:$0xff]  ;;  %1427 = vmatprep.subr.msk.mxu0 %vm285_vm0, %v84_v0  ;;  %v23_v4 = vld [vmem:[%s2417_s0 + $0x18] sm:$0xff]  ;;  %v25_v6 = vld [vmem:[%s2417_s0 + $0x28] sm:$0xff] }
   0x3   :  { %1429 = vmatprep.mubr.msk.f32.mxu0 %vm92_vm1, %v20_v1  ;;  %1428 = vmatpush3.msk.msra.mxu0 %vm285_vm0, %v84_v0  ;;  %v24_v5 = vld [vmem:[%s2417_s0 + $0x20] sm:$0xff]  ;;  %v26_v7 = vld [vmem:[%s2417_s0 + $0x30] sm:$0xff]  ;;  %v27_v8 = vld [vmem:[%s2417_s0 + $0x38] sm:$0xff] }
   0x4   :  { %1430 = vmatmul.mubr.msk.f32.vlgmr.msra.gmra.mxu0 %vm92_vm1, %v21_v2  ;;  %v28_v9 = vld [vmem:[%s2417_s0 + $0x40] sm:$0xff]  ;;  %v29_v10 = vld [vmem:[%s2417_s0 + $0x48] sm:$0xff]  ;;  %v30_v11 = vld [vmem:[%s2417_s0 + $0x50] sm:$0xff] }
   0x5   :  { %1432 = vmatprep.mubr.msk.f32.mxu0 %vm92_vm1, %v22_v3  ;;  %v31_v12 = vld [vmem:[%s2417_s0 + $0x58] sm:$0xff]  ;;  %v32_v13 = vld [vmem:[%s2417_s0 + $0x60] sm:$0xff]  ;;  %v752_v15 = vld [vmem:[%s2418_s3 + $0x70] sm:$0xff] }
   0x6   :  { %v753_v14 = vld [vmem:[%s2418_s3 + $0x78] sm:$0xff]  ;;  %v33_v16 = vld [vmem:[%s2417_s0 + $0x68] sm:$0xff]  ;;  %v34_v18 = vld [vmem:[%s2417_s0 + $0x70] sm:$0xff] }
   0x7   :  { %1525 = vmatprep.subr.mxu0 %v753_v14  ;;  %1653 = vmatprep.subr.mxu1 %v753_v14  ;;  %v751_v17 = vld [vmem:[%s2418_s3 + $0x68] sm:$0xff]  ;;  %v750_v19 = vld [vmem:[%s2418_s3 + $0x60] sm:$0xff]  ;;  %v35_v20 = vld [vmem:[%s2417_s0 + $0x78] sm:$0xff] }
   0x8   :  { %1433 = vmatmul.mubr.msk.f32.gmra.mxu0 %vm92_vm1, %v23_v4  ;;  %1669 = vmatpush3.msra.mxu1 %v753_v14  ;;  %v749_v21 = vld [vmem:[%s2418_s3 + $0x58] sm:$0xff]  ;;  %v36_v22 = vld [vmem:[%s2417_s0 + $0x80] sm:$0xff]  ;;  %v748_v23 = vld [vmem:[%s2418_s3 + $0x50] sm:$0xff] }
   0x9   :  { %1435 = vmatprep.mubr.msk.f32.mxu0 %vm92_vm1, %v24_v5  ;;  %1526 = vmatpush3.msra.mxu0 %v753_v14  ;;  %v37_v24 = vld [vmem:[%s2417_s0 + $0x88] sm:$0xff]  ;;  %v38_v26 = vld [vmem:[%s2417_s0 + $0x90] sm:$0xff]  ;;  %v746_v27 = vld [vmem:[%s2418_s3 + $0x40] sm:$0xff] }
   0xa   :  { %1527 = vmatprep.subr.mxu0 %v752_v15  ;;  %1654 = vmatprep.subr.mxu1 %v752_v15  ;;  %v747_v25 = vld [vmem:[%s2418_s3 + $0x48] sm:$0xff]  ;;  %v39_v28 = vld [vmem:[%s2417_s0 + $0x98] sm:$0xff]  ;;  %v40_v30 = vld [vmem:[%s2417_s0 + $0xa0] sm:$0xff] }
   0xb   :  { %1528 = vmatpush3.msra.mxu0 %v752_v15  ;;  %1670 = vmatpush3.msra.mxu1 %v752_v15  ;;  %v745_v29 = vld [vmem:[%s2418_s3 + $0x38] sm:$0xff]  ;;  %v744_v31 = vld [vmem:[%s2418_s3 + $0x30] sm:$0xff]  ;;  %v41_v32 = vld [vmem:[%s2417_s0 + $0xa8] sm:$0xff] }
   0xc   :  { %1436 = vmatmul.mubr.msk.f32.gmra.mxu0 %vm92_vm1, %v25_v6  ;;  %1529 = vmatprep.subr.mxu0 %v751_v17  ;;  %v743_v33 = vld [vmem:[%s2418_s3 + $0x28] sm:$0xff]  ;;  %v42_v34 = vld [vmem:[%s2417_s0 + $0xb0] sm:$0xff]  ;;  %v742_v35 = vld [vmem:[%s2418_s3 + $0x20] sm:$0xff] }
   0xd   :  { %1438 = vmatprep.mubr.msk.f32.mxu0 %vm92_vm1, %v26_v7  ;;  %1530 = vmatpush3.msra.mxu0 %v751_v17  ;;  %v43_v36 = vld [vmem:[%s2417_s0 + $0xb8] sm:$0xff]  ;;  %v44_v37 = vld [vmem:[%s2417_s0 + $0xc0] sm:$0xff]  ;;  %v45_v38 = vld [vmem:[%s2417_s0 + $0xc8] sm:$0xff] }
   0xe   :  { %1531 = vmatprep.subr.mxu0 %v750_v19  ;;  %1655 = vmatprep.subr.mxu1 %v751_v17  ;;  %v46_v39 = vld [vmem:[%s2417_s0 + $0xd0] sm:$0xff]  ;;  %v47_v40 = vld [vmem:[%s2417_s0 + $0xd8] sm:$0xff]  ;;  %v48_v41 = vld [vmem:[%s2417_s0 + $0xe0] sm:$0xff] }
   0xf   :  { %1532 = vmatpush3.msra.mxu0 %v750_v19  ;;  %1671 = vmatpush3.msra.mxu1 %v751_v17  ;;  %v49_v42 = vld [vmem:[%s2417_s0 + $0xe8] sm:$0xff]  ;;  %v50_v43 = vld [vmem:[%s2417_s0 + $0xf0] sm:$0xff]  ;;  %v51_v44 = vld [vmem:[%s2417_s0 + $0xf8] sm:$0xff] }
  0x10   :  { %1439 = vmatmul.mubr.msk.f32.gmra.mxu0 %vm92_vm1, %v27_v8  ;;  %1533 = vmatprep.subr.mxu0 %v749_v21  ;;  %v52_v45 = vld [vmem:[%s2417_s0 + $0x100] sm:$0xff]  ;;  %v53_v46 = vld [vmem:[%s2417_s0 + $0x108] sm:$0xff]  ;;  %v54_v47 = vld [vmem:[%s2417_s0 + $0x110] sm:$0xff] }
  0x11   :  { %1441 = vmatprep.mubr.msk.f32.mxu0 %vm92_vm1, %v28_v9  ;;  %1534 = vmatpush3.msra.mxu0 %v749_v21  ;;  %v741_v48 = vld [vmem:[%s2418_s3 + $0x18] sm:$0xff]  ;;  %v740_v50 = vld [vmem:[%s2418_s3 + $0x10] sm:$0xff]  ;;  %v56_v51 = vld [vmem:[%s2417_s0 + $0x120] sm:$0xff] }
  0x12   :  { %1535 = vmatprep.subr.mxu0 %v748_v23  ;;  %1656 = vmatprep.subr.mxu1 %v750_v19  ;;  %v55_v49 = vld [vmem:[%s2417_s0 + $0x118] sm:$0xff]  ;;  %v739_v52 = vld [vmem:[%s2418_s3 + $0x8] sm:$0xff]  ;;  %v738_v54 = vld [vmem:[%s2418_s3] sm:$0xff] }
  0x13   :  { %1536 = vmatpush3.msra.mxu0 %v748_v23  ;;  %1672 = vmatpush3.msra.mxu1 %v750_v19  ;;  %v57_v53 = vld [vmem:[%s2417_s0 + $0x128] sm:$0xff]  ;;  %v58_v55 = vld [vmem:[%s2417_s0 + $0x130] sm:$0xff]  ;;  %v59_v56 = vld [vmem:[%s2417_s0 + $0x138] sm:$0xff] }
  0x14   :  { %1442 = vmatmul.mubr.msk.f32.gmra.mxu0 %vm92_vm1, %v29_v10  ;;  %1537 = vmatprep.subr.mxu0 %v747_v25  ;;  %v60_v57 = vld [vmem:[%s2417_s0 + $0x140] sm:$0xff]  ;;  %v61_v58 = vld [vmem:[%s2417_s0 + $0x148] sm:$0xff]  ;;  %v62_v59 = vld [vmem:[%s2417_s0 + $0x150] sm:$0xff] }
  0x15   :  { %1444 = vmatprep.mubr.msk.f32.mxu0 %vm92_vm1, %v30_v11  ;;  %1538 = vmatpush3.msra.mxu0 %v747_v25  ;;  %v63_v60 = vld [vmem:[%s2417_s0 + $0x158] sm:$0xff]  ;;  %v64_v61 = vld [vmem:[%s2417_s0 + $0x160] sm:$0xff]  ;;  %v65_v62 = vld [vmem:[%s2417_s0 + $0x168] sm:$0xff] }
  0x16   :  { %1539 = vmatprep.subr.mxu0 %v746_v27  ;;  %1657 = vmatprep.subr.mxu1 %v749_v21  ;;  %v66_v63 = vld [vmem:[%s2417_s0 + $0x170] sm:$0xff]  ;;  %v67_v0 = vld [vmem:[%s2417_s0 + $0x178] sm:$0xff]  ;;  %v68_v1 = vld [vmem:[%s2417_s0 + $0x180] sm:$0xff] }
  0x17   :  { %1540 = vmatpush3.msra.mxu0 %v746_v27  ;;  %1673 = vmatpush3.msra.mxu1 %v749_v21  ;;  %v69_v2 = vld [vmem:[%s2417_s0 + $0x188] sm:$0xff]  ;;  %v70_v3 = vld [vmem:[%s2417_s0 + $0x190] sm:$0xff]  ;;  %v71_v4 = vld [vmem:[%s2417_s0 + $0x198] sm:$0xff] }
  0x18   :  { %1445 = vmatmul.mubr.msk.f32.gmra.mxu0 %vm92_vm1, %v31_v12  ;;  %1541 = vmatprep.subr.mxu0 %v745_v29  ;;  %v72_v5 = vld [vmem:[%s2417_s0 + $0x1a0] sm:$0xff]  ;;  %v73_v6 = vld [vmem:[%s2417_s0 + $0x1a8] sm:$0xff]  ;;  %v74_v7 = vld [vmem:[%s2417_s0 + $0x1b0] sm:$0xff] }
  0x19   :  { %1447 = vmatprep.mubr.msk.f32.mxu0 %vm92_vm1, %v32_v13  ;;  %1542 = vmatpush3.msra.mxu0 %v745_v29  ;;  %v75_v8 = vld [vmem:[%s2417_s0 + $0x1b8] sm:$0xff]  ;;  %v76_v9 = vld [vmem:[%s2417_s0 + $0x1c0] sm:$0xff]  ;;  %v77_v10 = vld [vmem:[%s2417_s0 + $0x1c8] sm:$0xff] }
  0x1a   :  { %1543 = vmatprep.subr.mxu0 %v744_v31  ;;  %1658 = vmatprep.subr.mxu1 %v748_v23  ;;  %v78_v11 = vld [vmem:[%s2417_s0 + $0x1d0] sm:$0xff]  ;;  %v79_v12 = vld [vmem:[%s2417_s0 + $0x1d8] sm:$0xff]  ;;  %v80_v13 = vld [vmem:[%s2417_s0 + $0x1e0] sm:$0xff] }
  0x1b   :  { %1544 = vmatpush3.msra.mxu0 %v744_v31  ;;  %1674 = vmatpush3.msra.mxu1 %v748_v23  ;;  %v81_v14 = vld [vmem:[%s2417_s0 + $0x1e8] sm:$0xff]  ;;  %v82_v15 = vld [vmem:[%s2417_s0 + $0x1f0] sm:$0xff]  ;;  %v2025_v17 = vld [vmem:[%s2419_s2] ss:$0 sm:$0xff] }
  0x1c   :  { %1448 = vmatmul.mubr.msk.f32.gmra.mxu0 %vm92_vm1, %v33_v16  ;;  %1545 = vmatprep.subr.mxu0 %v743_v33  ;;  %v83_v16 = vld [vmem:[%s2417_s0 + $0x1f8] sm:$0xff] }
  0x1d   :  { %1450 = vmatprep.mubr.msk.f32.mxu0 %vm92_vm1, %v34_v18  ;;  %1546 = vmatpush3.msra.mxu0 %v743_v33 }
  0x1e   :  { %1547 = vmatprep.subr.mxu0 %v742_v35  ;;  %1659 = vmatprep.subr.mxu1 %v747_v25 }
  0x1f   :  { %1548 = vmatpush3.msra.mxu0 %v742_v35  ;;  %1675 = vmatpush3.msra.mxu1 %v747_v25 }
  0x20   :  { %1451 = vmatmul.mubr.msk.f32.gmra.mxu0 %vm92_vm1, %v35_v20  ;;  %1660 = vmatprep.subr.mxu1 %v746_v27 }
  0x21   :  { %1453 = vmatprep.mubr.msk.f32.mxu0 %vm92_vm1, %v36_v22  ;;  %1676 = vmatpush3.msra.mxu1 %v746_v27 }
  0x22   :  { %1661 = vmatprep.subr.mxu1 %v745_v29  ;;  %1549 = vmatprep.subr.mxu0 %v741_v48 }
  0x23   :  { %1677 = vmatpush3.msra.mxu1 %v745_v29  ;;  %1550 = vmatpush3.msra.mxu0 %v741_v48 }
  0x24   :  { %1454 = vmatmul.mubr.msk.f32.gmra.mxu0 %vm92_vm1, %v37_v24  ;;  %1662 = vmatprep.subr.mxu1 %v744_v31 }
  0x25   :  { %1456 = vmatprep.mubr.msk.f32.mxu0 %vm92_vm1, %v38_v26  ;;  %1678 = vmatpush3.msra.mxu1 %v744_v31 }
  0x26   :  { %1663 = vmatprep.subr.mxu1 %v743_v33  ;;  %1551 = vmatprep.subr.mxu0 %v740_v50 }
  0x27   :  { %1679 = vmatpush3.msra.mxu1 %v743_v33  ;;  %1552 = vmatpush3.msra.mxu0 %v740_v50 }
  0x28   :  { %1457 = vmatmul.mubr.msk.f32.gmra.mxu0 %vm92_vm1, %v39_v28  ;;  %1664 = vmatprep.subr.mxu1 %v742_v35 }
  0x29   :  { %1459 = vmatprep.mubr.msk.f32.mxu0 %vm92_vm1, %v40_v30  ;;  %1680 = vmatpush3.msra.mxu1 %v742_v35 }
  0x2a   :  { %1665 = vmatprep.subr.mxu1 %v741_v48  ;;  %1553 = vmatprep.subr.mxu0 %v739_v52 }
  0x2b   :  { %1681 = vmatpush3.msra.mxu1 %v741_v48  ;;  %1554 = vmatpush3.msra.mxu0 %v739_v52 }
  0x2c   :  { %1460 = vmatmul.mubr.msk.f32.gmra.mxu0 %vm92_vm1, %v41_v32  ;;  %1555 = vmatprep.subr.mxu0 %v738_v54 }
  0x2d   :  { %1462 = vmatprep.mubr.msk.f32.mxu0 %vm92_vm1, %v42_v34  ;;  %1666 = vmatprep.subr.mxu1 %v740_v50 }
  0x2e   :  { %1556 = vmatpush3.msra.mxu0 %v738_v54  ;;  %1682 = vmatpush3.msra.mxu1 %v740_v50 }
  0x2f   :  { %1667 = vmatprep.subr.mxu1 %v739_v52 }
  0x30   :  { %1463 = vmatmul.mubr.msk.f32.gmra.mxu0 %vm92_vm1, %v43_v36  ;;  %1683 = vmatpush3.msra.mxu1 %v739_v52 }
  0x31   :  { %1465 = vmatprep.mubr.msk.f32.mxu0 %vm92_vm1, %v44_v37  ;;  %1668 = vmatprep.subr.mxu1 %v738_v54 }
  0x32   :  { %1684 = vmatpush3.msra.mxu1 %v738_v54 }
  0x34   :  { %1466 = vmatmul.mubr.msk.f32.gmra.mxu0 %vm92_vm1, %v45_v38 }
  0x35   :  { %1468 = vmatprep.mubr.msk.f32.mxu0 %vm92_vm1, %v46_v39 }
  0x38   :  { %1469 = vmatmul.mubr.msk.f32.gmra.mxu0 %vm92_vm1, %v47_v40 }
  0x39   :  { %1471 = vmatprep.mubr.msk.f32.mxu0 %vm92_vm1, %v48_v41 }
  0x3c   :  { %1472 = vmatmul.mubr.msk.f32.gmra.mxu0 %vm92_vm1, %v49_v42 }
  0x3d   :  { %1474 = vmatprep.mubr.msk.f32.mxu0 %vm92_vm1, %v50_v43 }
  0x40   :  { %1475 = vmatmul.mubr.msk.f32.gmra.mxu0 %vm92_vm1, %v51_v44 }
  0x41   :  { %1477 = vmatprep.mubr.msk.f32.mxu0 %vm92_vm1, %v52_v45 }
  0x44   :  { %1478 = vmatmul.mubr.msk.f32.gmra.mxu0 %vm92_vm1, %v53_v46 }
  0x45   :  { %1480 = vmatprep.mubr.msk.f32.mxu0 %vm92_vm1, %v54_v47 }
  0x48   :  { %1481 = vmatmul.mubr.msk.f32.gmra.mxu0 %vm92_vm1, %v55_v49 }
  0x49   :  { %1483 = vmatprep.mubr.msk.f32.mxu0 %vm92_vm1, %v56_v51 }
  0x4c   :  { %1484 = vmatmul.mubr.msk.f32.gmra.mxu0 %vm92_vm1, %v57_v53 }
  0x4d   :  { %1486 = vmatprep.mubr.msk.f32.mxu0 %vm92_vm1, %v58_v55 }
  0x50   :  { %1487 = vmatmul.mubr.msk.f32.gmra.mxu0 %vm92_vm1, %v59_v56 }
  0x51   :  { %1489 = vmatprep.mubr.msk.f32.mxu0 %vm92_vm1, %v60_v57 }
  0x54   :  { %1490 = vmatmul.mubr.msk.f32.gmra.mxu0 %vm92_vm1, %v61_v58 }
  0x55   :  { %1492 = vmatprep.mubr.msk.f32.mxu0 %vm92_vm1, %v62_v59 }
  0x58   :  { %1493 = vmatmul.mubr.msk.f32.gmra.mxu0 %vm92_vm1, %v63_v60 }
  0x59   :  { %1495 = vmatprep.mubr.msk.f32.mxu0 %vm92_vm1, %v64_v61 }
  0x5c   :  { %1496 = vmatmul.mubr.msk.f32.gmra.mxu0 %vm92_vm1, %v65_v62 }
  0x5d   :  { %1498 = vmatprep.mubr.msk.f32.mxu0 %vm92_vm1, %v66_v63 }
  0x60   :  { %1499 = vmatmul.mubr.msk.f32.gmra.mxu0 %vm92_vm1, %v67_v0 }
  0x61   :  { %1501 = vmatprep.mubr.msk.f32.mxu0 %vm92_vm1, %v68_v1 }
  0x64   :  { %1502 = vmatmul.mubr.msk.f32.gmra.mxu0 %vm92_vm1, %v69_v2 }
  0x65   :  { %1504 = vmatprep.mubr.msk.f32.mxu0 %vm92_vm1, %v70_v3 }
  0x68   :  { %1505 = vmatmul.mubr.msk.f32.gmra.mxu0 %vm92_vm1, %v71_v4 }
  0x69   :  { %1507 = vmatprep.mubr.msk.f32.mxu0 %vm92_vm1, %v72_v5 }
  0x6c   :  { %1508 = vmatmul.mubr.msk.f32.gmra.mxu0 %vm92_vm1, %v73_v6 }
  0x6d   :  { %1510 = vmatprep.mubr.msk.f32.mxu0 %vm92_vm1, %v74_v7 }
  0x70   :  { %1511 = vmatmul.mubr.msk.f32.gmra.mxu0 %vm92_vm1, %v75_v8 }
  0x71   :  { %1513 = vmatprep.mubr.msk.f32.mxu0 %vm92_vm1, %v76_v9 }
  0x74   :  { %1514 = vmatmul.mubr.msk.f32.gmra.mxu0 %vm92_vm1, %v77_v10 }
  0x75   :  { %1516 = vmatprep.mubr.msk.f32.mxu0 %vm92_vm1, %v78_v11 }
  0x78   :  { %1517 = vmatmul.mubr.msk.f32.gmra.mxu0 %vm92_vm1, %v79_v12 }
  0x79   :  { %1519 = vmatprep.mubr.msk.f32.mxu0 %vm92_vm1, %v80_v13 }
  0x7c   :  { %1520 = vmatmul.mubr.msk.f32.gmra.mxu0 %vm92_vm1, %v81_v14 }
  0x7d   :  { %1522 = vmatprep.mubr.msk.f32.mxu0 %vm92_vm1, %v82_v15 }
  0x80   :  { %1523 = vmatmul.mubr.msk.f32.gmra.mxu0 %vm92_vm1, %v83_v16 }
  0xc4   :  { %v1431_v18 = vpop.f32.mrf.mxu0 }
  0xc5   :  { %v361_v19 = vadd.f32 %v1431_v18, %v2025_v17 }
  0xc6   :  { %v355_v20 = vpop.f32.mrf.mxu0 }
  0xc7   :  { %v356_v21 = vadd.f32 %v2025_v17, %v355_v20  ;;  %v675_v24 = vmax.f32 %v361_v19, 0.0 }
  0xc8   :  { %v1434_v22 = vpop.f32.mrf.mxu0 }
  0xc9   :  { %v674_v23 = vmax.f32 %v356_v21, 0.0  ;;  %v371_v25 = vadd.f32 %v1434_v22, %v2025_v17 }
  0xca   :  { %v365_v26 = vpop.f32.mrf.mxu0 }
  0xcb   :  { %v366_v27 = vadd.f32 %v2025_v17, %v365_v26  ;;  %1557 = vmatprep.mubr.f32.mxu0 %v674_v23  ;;  %v677_v30 = vmax.f32 %v371_v25, 0.0 }
  0xcc   :  { %v1437_v28 = vpop.f32.mrf.mxu0  ;;  %1558 = vmatmul.mubr.f32.vlgmr.msra.gmra.mxu0 %v675_v24 }
  0xcd   :  { %v676_v29 = vmax.f32 %v366_v27, 0.0  ;;  %v381_v31 = vadd.f32 %v1437_v28, %v2025_v17 }
  0xce   :  { %v375_v32 = vpop.f32.mrf.mxu0 }
  0xcf   :  { %v376_v33 = vadd.f32 %v2025_v17, %v375_v32  ;;  %1560 = vmatprep.mubr.f32.mxu0 %v676_v29  ;;  %v679_v36 = vmax.f32 %v381_v31, 0.0 }
  0xd0   :  { %v1440_v34 = vpop.f32.mrf.mxu0  ;;  %1561 = vmatmul.mubr.f32.gmra.mxu0 %v677_v30 }
  0xd1   :  { %v678_v35 = vmax.f32 %v376_v33, 0.0  ;;  %v391_v37 = vadd.f32 %v1440_v34, %v2025_v17 }
  0xd2   :  { %v385_v38 = vpop.f32.mrf.mxu0 }
  0xd3   :  { %1563 = vmatprep.mubr.f32.mxu0 %v678_v35  ;;  %v386_v39 = vadd.f32 %v2025_v17, %v385_v38  ;;  %v681_v42 = vmax.f32 %v391_v37, 0.0 }
  0xd4   :  { %v1443_v40 = vpop.f32.mrf.mxu0  ;;  %1564 = vmatmul.mubr.f32.gmra.mxu0 %v679_v36 }
  0xd5   :  { %v680_v41 = vmax.f32 %v386_v39, 0.0  ;;  %v401_v43 = vadd.f32 %v1443_v40, %v2025_v17 }
  0xd6   :  { %v395_v44 = vpop.f32.mrf.mxu0 }
  0xd7   :  { %v396_v45 = vadd.f32 %v2025_v17, %v395_v44  ;;  %1566 = vmatprep.mubr.f32.mxu1 %v680_v41  ;;  %v683_v48 = vmax.f32 %v401_v43, 0.0 }
  0xd8   :  { %v1446_v46 = vpop.f32.mrf.mxu0  ;;  %1567 = vmatmul.mubr.f32.vlgmr.msra.gmra.mxu1 %v681_v42 }
  0xd9   :  { %v682_v47 = vmax.f32 %v396_v45, 0.0  ;;  %v411_v49 = vadd.f32 %v1446_v46, %v2025_v17 }
  0xda   :  { %v405_v50 = vpop.f32.mrf.mxu0 }
  0xdb   :  { %v406_v51 = vadd.f32 %v2025_v17, %v405_v50  ;;  %1569 = vmatprep.mubr.f32.mxu1 %v682_v47  ;;  %v685_v54 = vmax.f32 %v411_v49, 0.0 }
  0xdc   :  { %v1449_v52 = vpop.f32.mrf.mxu0  ;;  %1570 = vmatmul.mubr.f32.gmra.mxu1 %v683_v48 }
  0xdd   :  { %v684_v53 = vmax.f32 %v406_v51, 0.0  ;;  %v421_v55 = vadd.f32 %v1449_v52, %v2025_v17 }
  0xde   :  { %v415_v56 = vpop.f32.mrf.mxu0 }
  0xdf   :  { %v416_v57 = vadd.f32 %v2025_v17, %v415_v56  ;;  %1572 = vmatprep.mubr.f32.mxu1 %v684_v53  ;;  %v687_v60 = vmax.f32 %v421_v55, 0.0 }
  0xe0   :  { %v1452_v58 = vpop.f32.mrf.mxu0  ;;  %1573 = vmatmul.mubr.f32.gmra.mxu1 %v685_v54 }
  0xe1   :  { %v686_v59 = vmax.f32 %v416_v57, 0.0  ;;  %v431_v61 = vadd.f32 %v1452_v58, %v2025_v17 }
  0xe2   :  { %v425_v62 = vpop.f32.mrf.mxu0 }
  0xe3   :  { %v426_v63 = vadd.f32 %v2025_v17, %v425_v62  ;;  %1575 = vmatprep.mubr.f32.mxu1 %v686_v59  ;;  %v689_v2 = vmax.f32 %v431_v61, 0.0 }
  0xe4   :  { %v1455_v0 = vpop.f32.mrf.mxu0  ;;  %1576 = vmatmul.mubr.f32.gmra.mxu1 %v687_v60 }
  0xe5   :  { %v688_v1 = vmax.f32 %v426_v63, 0.0  ;;  %v441_v3 = vadd.f32 %v1455_v0, %v2025_v17 }
  0xe6   :  { %v435_v4 = vpop.f32.mrf.mxu0 }
  0xe7   :  { %v436_v5 = vadd.f32 %v2025_v17, %v435_v4  ;;  %1578 = vmatprep.mubr.f32.mxu1 %v688_v1  ;;  %v691_v8 = vmax.f32 %v441_v3, 0.0 }
  0xe8   :  { %v1458_v6 = vpop.f32.mrf.mxu0  ;;  %1579 = vmatmul.mubr.f32.gmra.mxu1 %v689_v2 }
  0xe9   :  { %v690_v7 = vmax.f32 %v436_v5, 0.0  ;;  %v451_v9 = vadd.f32 %v1458_v6, %v2025_v17 }
  0xea   :  { %v445_v10 = vpop.f32.mrf.mxu0 }
  0xeb   :  { %v446_v11 = vadd.f32 %v2025_v17, %v445_v10  ;;  %1581 = vmatprep.mubr.f32.mxu1 %v690_v7  ;;  %v693_v14 = vmax.f32 %v451_v9, 0.0 }
  0xec   :  { %v1461_v12 = vpop.f32.mrf.mxu0  ;;  %1582 = vmatmul.mubr.f32.gmra.mxu1 %v691_v8 }
  0xed   :  { %v692_v13 = vmax.f32 %v446_v11, 0.0  ;;  %v461_v15 = vadd.f32 %v1461_v12, %v2025_v17 }
  0xee   :  { %v455_v16 = vpop.f32.mrf.mxu0 }
  0xef   :  { %v456_v18 = vadd.f32 %v2025_v17, %v455_v16  ;;  %1584 = vmatprep.mubr.f32.mxu1 %v692_v13  ;;  %v695_v21 = vmax.f32 %v461_v15, 0.0 }
  0xf0   :  { %v1464_v19 = vpop.f32.mrf.mxu0  ;;  %1585 = vmatmul.mubr.f32.gmra.mxu1 %v693_v14 }
  0xf1   :  { %v694_v20 = vmax.f32 %v456_v18, 0.0  ;;  %v471_v22 = vadd.f32 %v1464_v19, %v2025_v17 }
  0xf2   :  { %v465_v23 = vpop.f32.mrf.mxu0 }
  0xf3   :  { %v466_v24 = vadd.f32 %v2025_v17, %v465_v23  ;;  %1587 = vmatprep.mubr.f32.mxu1 %v694_v20  ;;  %v697_v27 = vmax.f32 %v471_v22, 0.0 }
  0xf4   :  { %v1467_v25 = vpop.f32.mrf.mxu0  ;;  %1588 = vmatmul.mubr.f32.gmra.mxu1 %v695_v21 }
  0xf5   :  { %v696_v26 = vmax.f32 %v466_v24, 0.0  ;;  %v481_v28 = vadd.f32 %v1467_v25, %v2025_v17 }
  0xf6   :  { %v475_v29 = vpop.f32.mrf.mxu0 }
  0xf7   :  { %v476_v30 = vadd.f32 %v2025_v17, %v475_v29  ;;  %1590 = vmatprep.mubr.f32.mxu1 %v696_v26  ;;  %v699_v33 = vmax.f32 %v481_v28, 0.0 }
  0xf8   :  { %v1470_v31 = vpop.f32.mrf.mxu0  ;;  %1591 = vmatmul.mubr.f32.gmra.mxu1 %v697_v27 }
  0xf9   :  { %v698_v32 = vmax.f32 %v476_v30, 0.0  ;;  %v491_v34 = vadd.f32 %v1470_v31, %v2025_v17 }
  0xfa   :  { %v485_v35 = vpop.f32.mrf.mxu0 }
  0xfb   :  { %v486_v36 = vadd.f32 %v2025_v17, %v485_v35  ;;  %1593 = vmatprep.mubr.f32.mxu1 %v698_v32  ;;  %v701_v39 = vmax.f32 %v491_v34, 0.0 }
  0xfc   :  { %v1473_v37 = vpop.f32.mrf.mxu0  ;;  %1594 = vmatmul.mubr.f32.gmra.mxu1 %v699_v33 }
  0xfd   :  { %v700_v38 = vmax.f32 %v486_v36, 0.0  ;;  %v501_v40 = vadd.f32 %v1473_v37, %v2025_v17 }
  0xfe   :  { %v495_v41 = vpop.f32.mrf.mxu0 }
  0xff   :  { %v496_v42 = vadd.f32 %v2025_v17, %v495_v41  ;;  %1596 = vmatprep.mubr.f32.mxu1 %v700_v38  ;;  %v703_v45 = vmax.f32 %v501_v40, 0.0 }
 0x100   :  { %v1476_v43 = vpop.f32.mrf.mxu0  ;;  %1597 = vmatmul.mubr.f32.gmra.mxu1 %v701_v39 }
 0x101   :  { %v702_v44 = vmax.f32 %v496_v42, 0.0  ;;  %v511_v46 = vadd.f32 %v1476_v43, %v2025_v17 }
 0x102   :  { %v505_v47 = vpop.f32.mrf.mxu0 }
 0x103   :  { %v506_v48 = vadd.f32 %v2025_v17, %v505_v47  ;;  %1599 = vmatprep.mubr.f32.mxu1 %v702_v44  ;;  %v705_v51 = vmax.f32 %v511_v46, 0.0 }
 0x104   :  { %v1479_v49 = vpop.f32.mrf.mxu0  ;;  %1600 = vmatmul.mubr.f32.gmra.mxu1 %v703_v45 }
 0x105   :  { %v704_v50 = vmax.f32 %v506_v48, 0.0  ;;  %v521_v52 = vadd.f32 %v1479_v49, %v2025_v17 }
 0x106   :  { %v515_v53 = vpop.f32.mrf.mxu0 }
 0x107   :  { %v516_v54 = vadd.f32 %v2025_v17, %v515_v53  ;;  %1602 = vmatprep.mubr.f32.mxu1 %v704_v50  ;;  %v707_v57 = vmax.f32 %v521_v52, 0.0 }
 0x108   :  { %v1482_v55 = vpop.f32.mrf.mxu0  ;;  %1603 = vmatmul.mubr.f32.gmra.mxu1 %v705_v51 }
 0x109   :  { %v706_v56 = vmax.f32 %v516_v54, 0.0  ;;  %v531_v58 = vadd.f32 %v1482_v55, %v2025_v17 }
 0x10a   :  { %v525_v59 = vpop.f32.mrf.mxu0 }
 0x10b   :  { %v526_v60 = vadd.f32 %v2025_v17, %v525_v59  ;;  %1605 = vmatprep.mubr.f32.mxu1 %v706_v56  ;;  %v709_v63 = vmax.f32 %v531_v58, 0.0 }
 0x10c   :  { %v1485_v61 = vpop.f32.mrf.mxu0  ;;  %1606 = vmatmul.mubr.f32.gmra.mxu1 %v707_v57 }
 0x10d   :  { %v708_v62 = vmax.f32 %v526_v60, 0.0  ;;  %v541_v0 = vadd.f32 %v1485_v61, %v2025_v17 }
 0x10e   :  { %v535_v1 = vpop.f32.mrf.mxu0 }
 0x10f   :  { %v536_v2 = vadd.f32 %v2025_v17, %v535_v1  ;;  %1608 = vmatprep.mubr.f32.mxu1 %v708_v62  ;;  %v711_v5 = vmax.f32 %v541_v0, 0.0 }
 0x110   :  { %v1488_v3 = vpop.f32.mrf.mxu0  ;;  %1609 = vmatmul.mubr.f32.gmra.mxu1 %v709_v63 }
 0x111   :  { %v710_v4 = vmax.f32 %v536_v2, 0.0  ;;  %v551_v6 = vadd.f32 %v1488_v3, %v2025_v17 }
 0x112   :  { %v545_v7 = vpop.f32.mrf.mxu0 }
 0x113   :  { %v546_v8 = vadd.f32 %v2025_v17, %v545_v7  ;;  %1611 = vmatprep.mubr.f32.mxu1 %v710_v4  ;;  %v713_v11 = vmax.f32 %v551_v6, 0.0 }
 0x114   :  { %v1491_v9 = vpop.f32.mrf.mxu0  ;;  %1612 = vmatmul.mubr.f32.gmra.mxu1 %v711_v5 }
 0x115   :  { %v712_v10 = vmax.f32 %v546_v8, 0.0  ;;  %v561_v12 = vadd.f32 %v1491_v9, %v2025_v17 }
 0x116   :  { %v555_v13 = vpop.f32.mrf.mxu0 }
 0x117   :  { %v556_v14 = vadd.f32 %v2025_v17, %v555_v13  ;;  %1614 = vmatprep.mubr.f32.mxu1 %v712_v10  ;;  %v715_v18 = vmax.f32 %v561_v12, 0.0 }
 0x118   :  { %v1494_v15 = vpop.f32.mrf.mxu0  ;;  %1615 = vmatmul.mubr.f32.gmra.mxu1 %v713_v11 }
 0x119   :  { %v714_v16 = vmax.f32 %v556_v14, 0.0  ;;  %v571_v19 = vadd.f32 %v1494_v15, %v2025_v17 }
 0x11a   :  { %v565_v20 = vpop.f32.mrf.mxu0 }
 0x11b   :  { %v566_v21 = vadd.f32 %v2025_v17, %v565_v20  ;;  %1617 = vmatprep.mubr.f32.mxu1 %v714_v16  ;;  %v717_v24 = vmax.f32 %v571_v19, 0.0 }
 0x11c   :  { %v1497_v22 = vpop.f32.mrf.mxu0  ;;  %1618 = vmatmul.mubr.f32.gmra.mxu1 %v715_v18 }
 0x11d   :  { %v716_v23 = vmax.f32 %v566_v21, 0.0  ;;  %v581_v25 = vadd.f32 %v1497_v22, %v2025_v17  ;;  %v2094_v21 = vld [vmem:[%s2420_s4] ss:$0 sm:$0xff] }
 0x11e   :  { %v575_v26 = vpop.f32.mrf.mxu0 }
 0x11f   :  { %v576_v27 = vadd.f32 %v2025_v17, %v575_v26  ;;  %1620 = vmatprep.mubr.f32.mxu1 %v716_v23  ;;  %v719_v30 = vmax.f32 %v581_v25, 0.0 }
 0x120   :  { %v1500_v28 = vpop.f32.mrf.mxu0  ;;  %1621 = vmatmul.mubr.f32.gmra.mxu1 %v717_v24 }
 0x121   :  { %v718_v29 = vmax.f32 %v576_v27, 0.0  ;;  %v591_v31 = vadd.f32 %v1500_v28, %v2025_v17 }
 0x122   :  { %v585_v32 = vpop.f32.mrf.mxu0 }
 0x123   :  { %v586_v33 = vadd.f32 %v2025_v17, %v585_v32  ;;  %1623 = vmatprep.mubr.f32.mxu1 %v718_v29  ;;  %v721_v36 = vmax.f32 %v591_v31, 0.0 }
 0x124   :  { %v1503_v34 = vpop.f32.mrf.mxu0  ;;  %1624 = vmatmul.mubr.f32.gmra.mxu1 %v719_v30 }
 0x125   :  { %v720_v35 = vmax.f32 %v586_v33, 0.0  ;;  %v601_v37 = vadd.f32 %v1503_v34, %v2025_v17 }
 0x126   :  { %v595_v38 = vpop.f32.mrf.mxu0 }
 0x127   :  { %v596_v39 = vadd.f32 %v2025_v17, %v595_v38  ;;  %1626 = vmatprep.mubr.f32.mxu1 %v720_v35  ;;  %v723_v42 = vmax.f32 %v601_v37, 0.0 }
 0x128   :  { %v1506_v40 = vpop.f32.mrf.mxu0  ;;  %1627 = vmatmul.mubr.f32.gmra.mxu1 %v721_v36 }
 0x129   :  { %v722_v41 = vmax.f32 %v596_v39, 0.0  ;;  %v611_v43 = vadd.f32 %v1506_v40, %v2025_v17 }
 0x12a   :  { %v605_v44 = vpop.f32.mrf.mxu0 }
 0x12b   :  { %v606_v45 = vadd.f32 %v2025_v17, %v605_v44  ;;  %1629 = vmatprep.mubr.f32.mxu1 %v722_v41  ;;  %v725_v48 = vmax.f32 %v611_v43, 0.0 }
 0x12c   :  { %v1509_v46 = vpop.f32.mrf.mxu0  ;;  %1630 = vmatmul.mubr.f32.gmra.mxu1 %v723_v42 }
 0x12d   :  { %v724_v47 = vmax.f32 %v606_v45, 0.0  ;;  %v621_v49 = vadd.f32 %v1509_v46, %v2025_v17 }
 0x12e   :  { %v615_v50 = vpop.f32.mrf.mxu0 }
 0x12f   :  { %v616_v51 = vadd.f32 %v2025_v17, %v615_v50  ;;  %1632 = vmatprep.mubr.f32.mxu1 %v724_v47  ;;  %v727_v54 = vmax.f32 %v621_v49, 0.0 }
 0x130   :  { %v1512_v52 = vpop.f32.mrf.mxu0  ;;  %1633 = vmatmul.mubr.f32.gmra.mxu1 %v725_v48 }
 0x131   :  { %v726_v53 = vmax.f32 %v616_v51, 0.0  ;;  %v631_v55 = vadd.f32 %v1512_v52, %v2025_v17 }
 0x132   :  { %v625_v56 = vpop.f32.mrf.mxu0 }
 0x133   :  { %v626_v57 = vadd.f32 %v2025_v17, %v625_v56  ;;  %1635 = vmatprep.mubr.f32.mxu1 %v726_v53  ;;  %v729_v60 = vmax.f32 %v631_v55, 0.0 }
 0x134   :  { %v1515_v58 = vpop.f32.mrf.mxu0  ;;  %1636 = vmatmul.mubr.f32.gmra.mxu1 %v727_v54 }
 0x135   :  { %v728_v59 = vmax.f32 %v626_v57, 0.0  ;;  %v641_v61 = vadd.f32 %v1515_v58, %v2025_v17 }
 0x136   :  { %v635_v62 = vpop.f32.mrf.mxu0 }
 0x137   :  { %v636_v63 = vadd.f32 %v2025_v17, %v635_v62  ;;  %1638 = vmatprep.mubr.f32.mxu1 %v728_v59  ;;  %v731_v2 = vmax.f32 %v641_v61, 0.0 }
 0x138   :  { %v1518_v0 = vpop.f32.mrf.mxu0  ;;  %1639 = vmatmul.mubr.f32.gmra.mxu1 %v729_v60 }
 0x139   :  { %v730_v1 = vmax.f32 %v636_v63, 0.0  ;;  %v651_v3 = vadd.f32 %v1518_v0, %v2025_v17 }
 0x13a   :  { %v645_v4 = vpop.f32.mrf.mxu0 }
 0x13b   :  { %v646_v5 = vadd.f32 %v2025_v17, %v645_v4  ;;  %1641 = vmatprep.mubr.f32.mxu1 %v730_v1  ;;  %v733_v8 = vmax.f32 %v651_v3, 0.0 }
 0x13c   :  { %v1521_v6 = vpop.f32.mrf.mxu0  ;;  %1642 = vmatmul.mubr.f32.gmra.mxu1 %v731_v2 }
 0x13d   :  { %v732_v7 = vmax.f32 %v646_v5, 0.0  ;;  %v661_v9 = vadd.f32 %v1521_v6, %v2025_v17 }
 0x13e   :  { %v655_v10 = vpop.f32.mrf.mxu0 }
 0x13f   :  { %v656_v11 = vadd.f32 %v2025_v17, %v655_v10  ;;  %1644 = vmatprep.mubr.f32.mxu1 %v732_v7  ;;  %v735_v14 = vmax.f32 %v661_v9, 0.0 }
 0x140   :  { %v1524_v12 = vpop.f32.mrf.mxu0  ;;  %1645 = vmatmul.mubr.f32.gmra.mxu1 %v733_v8 }
 0x141   :  { %v734_v13 = vmax.f32 %v656_v11, 0.0  ;;  %v671_v15 = vadd.f32 %v1524_v12, %v2025_v17 }
 0x142   :  { %v665_v16 = vpop.f32.mrf.mxu0 }
 0x143   :  { %v666_v18 = vadd.f32 %v2025_v17, %v665_v16  ;;  %1647 = vmatprep.mubr.f32.mxu1 %v734_v13  ;;  %v737_v20 = vmax.f32 %v671_v15, 0.0 }
 0x144   :  { %1648 = vmatmul.mubr.f32.gmra.mxu1 %v735_v14 }
 0x145   :  { %v736_v19 = vmax.f32 %v666_v18, 0.0 }
 0x147   :  { %1650 = vmatprep.mubr.f32.mxu1 %v736_v19 }
 0x148   :  { %1651 = vmatmul.mubr.f32.gmra.mxu1 %v737_v20 }
 0x18c   :  { %v1559_v22 = vpop.f32.mrf.mxu0 }
 0x18d   :  { %v833_v23 = vadd.f32 %v1559_v22, %v2094_v21 }
 0x18e   :  { %v827_v24 = vpop.f32.mrf.mxu0 }
 0x18f   :  { %1148 = vst.msk [vmem:[%s2421_s5 + $0x8] sm:$0xff] %vm1146_vm2, %v833_v23  ;;  %v828_v17 = vadd.f32 %v2094_v21, %v827_v24 }
 0x190   :  { %v1562_v25 = vpop.f32.mrf.mxu0 }
 0x191   :  { %1147 = vst.msk [vmem:[%s2421_s5] sm:$0xff] %vm1146_vm2, %v828_v17  ;;  %v843_v26 = vadd.f32 %v1562_v25, %v2094_v21 }
 0x192   :  { %v837_v27 = vpop.f32.mrf.mxu0 }
 0x193   :  { %1150 = vst.msk [vmem:[%s2421_s5 + $0x18] sm:$0xff] %vm1146_vm2, %v843_v26  ;;  %v838_v28 = vadd.f32 %v2094_v21, %v837_v27 }
 0x194   :  { %v1565_v29 = vpop.f32.mrf.mxu0 }
 0x195   :  { %1149 = vst.msk [vmem:[%s2421_s5 + $0x10] sm:$0xff] %vm1146_vm2, %v838_v28  ;;  %v853_v30 = vadd.f32 %v1565_v29, %v2094_v21 }
 0x196   :  { %v847_v31 = vpop.f32.mrf.mxu0 }
 0x197   :  { %1152 = vst.msk [vmem:[%s2421_s5 + $0x28] sm:$0xff] %vm1146_vm2, %v853_v30  ;;  %v848_v32 = vadd.f32 %v2094_v21, %v847_v31 }
 0x198   :  { %v1568_v33 = vpop.f32.mrf.mxu1 }
 0x199   :  { %1151 = vst.msk [vmem:[%s2421_s5 + $0x20] sm:$0xff] %vm1146_vm2, %v848_v32  ;;  %v863_v34 = vadd.f32 %v1568_v33, %v2094_v21 }
 0x19a   :  { %v857_v35 = vpop.f32.mrf.mxu1 }
 0x19b   :  { %1154 = vst.msk [vmem:[%s2421_s5 + $0x38] sm:$0xff] %vm1146_vm2, %v863_v34  ;;  %v858_v36 = vadd.f32 %v2094_v21, %v857_v35 }
 0x19c   :  { %v1571_v37 = vpop.f32.mrf.mxu1 }
 0x19d   :  { %1153 = vst.msk [vmem:[%s2421_s5 + $0x30] sm:$0xff] %vm1146_vm2, %v858_v36  ;;  %v873_v38 = vadd.f32 %v1571_v37, %v2094_v21 }
 0x19e   :  { %v867_v39 = vpop.f32.mrf.mxu1 }
 0x19f   :  { %1156 = vst.msk [vmem:[%s2421_s5 + $0x48] sm:$0xff] %vm1146_vm2, %v873_v38  ;;  %v868_v40 = vadd.f32 %v2094_v21, %v867_v39 }
 0x1a0   :  { %v1574_v41 = vpop.f32.mrf.mxu1 }
 0x1a1   :  { %1155 = vst.msk [vmem:[%s2421_s5 + $0x40] sm:$0xff] %vm1146_vm2, %v868_v40  ;;  %v883_v42 = vadd.f32 %v1574_v41, %v2094_v21 }
 0x1a2   :  { %v877_v43 = vpop.f32.mrf.mxu1 }
 0x1a3   :  { %1158 = vst.msk [vmem:[%s2421_s5 + $0x58] sm:$0xff] %vm1146_vm2, %v883_v42  ;;  %v878_v44 = vadd.f32 %v2094_v21, %v877_v43 }
 0x1a4   :  { %v1577_v45 = vpop.f32.mrf.mxu1 }
 0x1a5   :  { %1157 = vst.msk [vmem:[%s2421_s5 + $0x50] sm:$0xff] %vm1146_vm2, %v878_v44  ;;  %v893_v46 = vadd.f32 %v1577_v45, %v2094_v21 }
 0x1a6   :  { %v887_v47 = vpop.f32.mrf.mxu1 }
 0x1a7   :  { %1160 = vst.msk [vmem:[%s2421_s5 + $0x68] sm:$0xff] %vm1146_vm2, %v893_v46  ;;  %v888_v48 = vadd.f32 %v2094_v21, %v887_v47 }
 0x1a8   :  { %v1580_v49 = vpop.f32.mrf.mxu1 }
 0x1a9   :  { %1159 = vst.msk [vmem:[%s2421_s5 + $0x60] sm:$0xff] %vm1146_vm2, %v888_v48  ;;  %v903_v50 = vadd.f32 %v1580_v49, %v2094_v21 }
 0x1aa   :  { %v897_v51 = vpop.f32.mrf.mxu1 }
 0x1ab   :  { %1162 = vst.msk [vmem:[%s2421_s5 + $0x78] sm:$0xff] %vm1146_vm2, %v903_v50  ;;  %v898_v52 = vadd.f32 %v2094_v21, %v897_v51 }
 0x1ac   :  { %v1583_v53 = vpop.f32.mrf.mxu1 }
 0x1ad   :  { %1161 = vst.msk [vmem:[%s2421_s5 + $0x70] sm:$0xff] %vm1146_vm2, %v898_v52  ;;  %v913_v54 = vadd.f32 %v1583_v53, %v2094_v21 }
 0x1ae   :  { %v907_v55 = vpop.f32.mrf.mxu1 }
 0x1af   :  { %1164 = vst.msk [vmem:[%s2421_s5 + $0x88] sm:$0xff] %vm1146_vm2, %v913_v54  ;;  %v908_v56 = vadd.f32 %v2094_v21, %v907_v55 }
 0x1b0   :  { %v1586_v57 = vpop.f32.mrf.mxu1 }
 0x1b1   :  { %1163 = vst.msk [vmem:[%s2421_s5 + $0x80] sm:$0xff] %vm1146_vm2, %v908_v56  ;;  %v923_v58 = vadd.f32 %v1586_v57, %v2094_v21 }
 0x1b2   :  { %v917_v59 = vpop.f32.mrf.mxu1 }
 0x1b3   :  { %1166 = vst.msk [vmem:[%s2421_s5 + $0x98] sm:$0xff] %vm1146_vm2, %v923_v58  ;;  %v918_v60 = vadd.f32 %v2094_v21, %v917_v59 }
 0x1b4   :  { %v1589_v61 = vpop.f32.mrf.mxu1 }
 0x1b5   :  { %1165 = vst.msk [vmem:[%s2421_s5 + $0x90] sm:$0xff] %vm1146_vm2, %v918_v60  ;;  %v933_v62 = vadd.f32 %v1589_v61, %v2094_v21 }
 0x1b6   :  { %v927_v63 = vpop.f32.mrf.mxu1 }
 0x1b7   :  { %1168 = vst.msk [vmem:[%s2421_s5 + $0xa8] sm:$0xff] %vm1146_vm2, %v933_v62  ;;  %v928_v0 = vadd.f32 %v2094_v21, %v927_v63 }
 0x1b8   :  { %v1592_v1 = vpop.f32.mrf.mxu1 }
 0x1b9   :  { %1167 = vst.msk [vmem:[%s2421_s5 + $0xa0] sm:$0xff] %vm1146_vm2, %v928_v0  ;;  %v943_v2 = vadd.f32 %v1592_v1, %v2094_v21 }
 0x1ba   :  { %v937_v3 = vpop.f32.mrf.mxu1 }
 0x1bb   :  { %1170 = vst.msk [vmem:[%s2421_s5 + $0xb8] sm:$0xff] %vm1146_vm2, %v943_v2  ;;  %v938_v4 = vadd.f32 %v2094_v21, %v937_v3 }
 0x1bc   :  { %v1595_v5 = vpop.f32.mrf.mxu1 }
 0x1bd   :  { %1169 = vst.msk [vmem:[%s2421_s5 + $0xb0] sm:$0xff] %vm1146_vm2, %v938_v4  ;;  %v953_v6 = vadd.f32 %v1595_v5, %v2094_v21 }
 0x1be   :  { %v947_v7 = vpop.f32.mrf.mxu1 }
 0x1bf   :  { %1172 = vst.msk [vmem:[%s2421_s5 + $0xc8] sm:$0xff] %vm1146_vm2, %v953_v6  ;;  %v948_v8 = vadd.f32 %v2094_v21, %v947_v7 }
 0x1c0   :  { %v1598_v9 = vpop.f32.mrf.mxu1 }
 0x1c1   :  { %1171 = vst.msk [vmem:[%s2421_s5 + $0xc0] sm:$0xff] %vm1146_vm2, %v948_v8  ;;  %v963_v10 = vadd.f32 %v1598_v9, %v2094_v21 }
 0x1c2   :  { %v957_v11 = vpop.f32.mrf.mxu1 }
 0x1c3   :  { %1174 = vst.msk [vmem:[%s2421_s5 + $0xd8] sm:$0xff] %vm1146_vm2, %v963_v10  ;;  %v958_v12 = vadd.f32 %v2094_v21, %v957_v11 }
 0x1c4   :  { %v1601_v13 = vpop.f32.mrf.mxu1 }
 0x1c5   :  { %1173 = vst.msk [vmem:[%s2421_s5 + $0xd0] sm:$0xff] %vm1146_vm2, %v958_v12  ;;  %v973_v14 = vadd.f32 %v1601_v13, %v2094_v21 }
 0x1c6   :  { %v967_v15 = vpop.f32.mrf.mxu1 }
 0x1c7   :  { %1176 = vst.msk [vmem:[%s2421_s5 + $0xe8] sm:$0xff] %vm1146_vm2, %v973_v14  ;;  %v968_v16 = vadd.f32 %v2094_v21, %v967_v15 }
 0x1c8   :  { %v1604_v18 = vpop.f32.mrf.mxu1 }
 0x1c9   :  { %1175 = vst.msk [vmem:[%s2421_s5 + $0xe0] sm:$0xff] %vm1146_vm2, %v968_v16  ;;  %v983_v19 = vadd.f32 %v1604_v18, %v2094_v21 }
 0x1ca   :  { %v977_v20 = vpop.f32.mrf.mxu1 }
 0x1cb   :  { %1178 = vst.msk [vmem:[%s2421_s5 + $0xf8] sm:$0xff] %vm1146_vm2, %v983_v19  ;;  %v978_v22 = vadd.f32 %v2094_v21, %v977_v20 }
 0x1cc   :  { %v1607_v23 = vpop.f32.mrf.mxu1 }
 0x1cd   :  { %1177 = vst.msk [vmem:[%s2421_s5 + $0xf0] sm:$0xff] %vm1146_vm2, %v978_v22  ;;  %v993_v24 = vadd.f32 %v1607_v23, %v2094_v21 }
 0x1ce   :  { %v987_v17 = vpop.f32.mrf.mxu1 }
 0x1cf   :  { %1180 = vst.msk [vmem:[%s2421_s5 + $0x108] sm:$0xff] %vm1146_vm2, %v993_v24  ;;  %v988_v25 = vadd.f32 %v2094_v21, %v987_v17 }
 0x1d0   :  { %v1610_v26 = vpop.f32.mrf.mxu1 }
 0x1d1   :  { %1179 = vst.msk [vmem:[%s2421_s5 + $0x100] sm:$0xff] %vm1146_vm2, %v988_v25  ;;  %v1003_v27 = vadd.f32 %v1610_v26, %v2094_v21 }
 0x1d2   :  { %v997_v28 = vpop.f32.mrf.mxu1 }
 0x1d3   :  { %1182 = vst.msk [vmem:[%s2421_s5 + $0x118] sm:$0xff] %vm1146_vm2, %v1003_v27  ;;  %v998_v29 = vadd.f32 %v2094_v21, %v997_v28 }
 0x1d4   :  { %v1613_v30 = vpop.f32.mrf.mxu1 }
 0x1d5   :  { %1181 = vst.msk [vmem:[%s2421_s5 + $0x110] sm:$0xff] %vm1146_vm2, %v998_v29  ;;  %v1013_v31 = vadd.f32 %v1613_v30, %v2094_v21 }
 0x1d6   :  { %v1007_v32 = vpop.f32.mrf.mxu1 }
 0x1d7   :  { %1184 = vst.msk [vmem:[%s2421_s5 + $0x128] sm:$0xff] %vm1146_vm2, %v1013_v31  ;;  %v1008_v33 = vadd.f32 %v2094_v21, %v1007_v32 }
 0x1d8   :  { %v1616_v34 = vpop.f32.mrf.mxu1 }
 0x1d9   :  { %1183 = vst.msk [vmem:[%s2421_s5 + $0x120] sm:$0xff] %vm1146_vm2, %v1008_v33  ;;  %v1023_v35 = vadd.f32 %v1616_v34, %v2094_v21 }
 0x1da   :  { %v1017_v36 = vpop.f32.mrf.mxu1 }
 0x1db   :  { %1186 = vst.msk [vmem:[%s2421_s5 + $0x138] sm:$0xff] %vm1146_vm2, %v1023_v35  ;;  %v1018_v37 = vadd.f32 %v2094_v21, %v1017_v36 }
 0x1dc   :  { %v1619_v38 = vpop.f32.mrf.mxu1 }
 0x1dd   :  { %1185 = vst.msk [vmem:[%s2421_s5 + $0x130] sm:$0xff] %vm1146_vm2, %v1018_v37  ;;  %v1033_v39 = vadd.f32 %v1619_v38, %v2094_v21 }
 0x1de   :  { %v1027_v40 = vpop.f32.mrf.mxu1 }
 0x1df   :  { %1188 = vst.msk [vmem:[%s2421_s5 + $0x148] sm:$0xff] %vm1146_vm2, %v1033_v39  ;;  %v1028_v41 = vadd.f32 %v2094_v21, %v1027_v40 }
 0x1e0   :  { %v1622_v42 = vpop.f32.mrf.mxu1 }
 0x1e1   :  { %1187 = vst.msk [vmem:[%s2421_s5 + $0x140] sm:$0xff] %vm1146_vm2, %v1028_v41  ;;  %v1043_v43 = vadd.f32 %v1622_v42, %v2094_v21 }
 0x1e2   :  { %v1037_v44 = vpop.f32.mrf.mxu1 }
 0x1e3   :  { %1190 = vst.msk [vmem:[%s2421_s5 + $0x158] sm:$0xff] %vm1146_vm2, %v1043_v43  ;;  %v1038_v45 = vadd.f32 %v2094_v21, %v1037_v44 }
 0x1e4   :  { %v1625_v46 = vpop.f32.mrf.mxu1 }
 0x1e5   :  { %1189 = vst.msk [vmem:[%s2421_s5 + $0x150] sm:$0xff] %vm1146_vm2, %v1038_v45  ;;  %v1053_v47 = vadd.f32 %v1625_v46, %v2094_v21 }
 0x1e6   :  { %v1047_v48 = vpop.f32.mrf.mxu1 }
 0x1e7   :  { %1192 = vst.msk [vmem:[%s2421_s5 + $0x168] sm:$0xff] %vm1146_vm2, %v1053_v47  ;;  %v1048_v49 = vadd.f32 %v2094_v21, %v1047_v48 }
 0x1e8   :  { %v1628_v50 = vpop.f32.mrf.mxu1 }
 0x1e9   :  { %1191 = vst.msk [vmem:[%s2421_s5 + $0x160] sm:$0xff] %vm1146_vm2, %v1048_v49  ;;  %v1063_v51 = vadd.f32 %v1628_v50, %v2094_v21 }
 0x1ea   :  { %v1057_v52 = vpop.f32.mrf.mxu1 }
 0x1eb   :  { %1194 = vst.msk [vmem:[%s2421_s5 + $0x178] sm:$0xff] %vm1146_vm2, %v1063_v51  ;;  %v1058_v53 = vadd.f32 %v2094_v21, %v1057_v52 }
 0x1ec   :  { %v1631_v54 = vpop.f32.mrf.mxu1 }
 0x1ed   :  { %1193 = vst.msk [vmem:[%s2421_s5 + $0x170] sm:$0xff] %vm1146_vm2, %v1058_v53  ;;  %v1073_v55 = vadd.f32 %v1631_v54, %v2094_v21 }
 0x1ee   :  { %v1067_v56 = vpop.f32.mrf.mxu1 }
 0x1ef   :  { %1196 = vst.msk [vmem:[%s2421_s5 + $0x188] sm:$0xff] %vm1146_vm2, %v1073_v55  ;;  %v1068_v57 = vadd.f32 %v2094_v21, %v1067_v56 }
 0x1f0   :  { %v1634_v58 = vpop.f32.mrf.mxu1 }
 0x1f1   :  { %1195 = vst.msk [vmem:[%s2421_s5 + $0x180] sm:$0xff] %vm1146_vm2, %v1068_v57  ;;  %v1083_v59 = vadd.f32 %v1634_v58, %v2094_v21 }
 0x1f2   :  { %v1077_v60 = vpop.f32.mrf.mxu1 }
 0x1f3   :  { %1198 = vst.msk [vmem:[%s2421_s5 + $0x198] sm:$0xff] %vm1146_vm2, %v1083_v59  ;;  %v1078_v61 = vadd.f32 %v2094_v21, %v1077_v60 }
 0x1f4   :  { %v1637_v62 = vpop.f32.mrf.mxu1 }
 0x1f5   :  { %1197 = vst.msk [vmem:[%s2421_s5 + $0x190] sm:$0xff] %vm1146_vm2, %v1078_v61  ;;  %v1093_v63 = vadd.f32 %v1637_v62, %v2094_v21 }
 0x1f6   :  { %v1087_v0 = vpop.f32.mrf.mxu1 }
 0x1f7   :  { %1200 = vst.msk [vmem:[%s2421_s5 + $0x1a8] sm:$0xff] %vm1146_vm2, %v1093_v63  ;;  %v1088_v1 = vadd.f32 %v2094_v21, %v1087_v0 }
 0x1f8   :  { %v1640_v2 = vpop.f32.mrf.mxu1 }
 0x1f9   :  { %1199 = vst.msk [vmem:[%s2421_s5 + $0x1a0] sm:$0xff] %vm1146_vm2, %v1088_v1  ;;  %v1103_v3 = vadd.f32 %v1640_v2, %v2094_v21 }
 0x1fa   :  { %v1097_v4 = vpop.f32.mrf.mxu1 }
 0x1fb   :  { %1202 = vst.msk [vmem:[%s2421_s5 + $0x1b8] sm:$0xff] %vm1146_vm2, %v1103_v3  ;;  %v1098_v5 = vadd.f32 %v2094_v21, %v1097_v4 }
 0x1fc   :  { %v1643_v6 = vpop.f32.mrf.mxu1 }
 0x1fd   :  { %1201 = vst.msk [vmem:[%s2421_s5 + $0x1b0] sm:$0xff] %vm1146_vm2, %v1098_v5  ;;  %v1113_v7 = vadd.f32 %v1643_v6, %v2094_v21 }
 0x1fe   :  { %v1107_v8 = vpop.f32.mrf.mxu1 }
 0x1ff   :  { %1204 = vst.msk [vmem:[%s2421_s5 + $0x1c8] sm:$0xff] %vm1146_vm2, %v1113_v7  ;;  %v1108_v9 = vadd.f32 %v2094_v21, %v1107_v8 }
 0x200   :  { %v1646_v10 = vpop.f32.mrf.mxu1 }
 0x201   :  { %1203 = vst.msk [vmem:[%s2421_s5 + $0x1c0] sm:$0xff] %vm1146_vm2, %v1108_v9  ;;  %v1123_v11 = vadd.f32 %v1646_v10, %v2094_v21 }
 0x202   :  { %v1117_v12 = vpop.f32.mrf.mxu1 }
 0x203   :  { %1206 = vst.msk [vmem:[%s2421_s5 + $0x1d8] sm:$0xff] %vm1146_vm2, %v1123_v11  ;;  %v1118_v13 = vadd.f32 %v2094_v21, %v1117_v12 }
 0x204   :  { %v1649_v14 = vpop.f32.mrf.mxu1 }
 0x205   :  { %1205 = vst.msk [vmem:[%s2421_s5 + $0x1d0] sm:$0xff] %vm1146_vm2, %v1118_v13  ;;  %v1133_v15 = vadd.f32 %v1649_v14, %v2094_v21 }
 0x206   :  { %v1127_v16 = vpop.f32.mrf.mxu1 }
 0x207   :  { %1208 = vst.msk [vmem:[%s2421_s5 + $0x1e8] sm:$0xff] %vm1146_vm2, %v1133_v15  ;;  %v1128_v18 = vadd.f32 %v2094_v21, %v1127_v16 }
 0x208   :  { %v1652_v19 = vpop.f32.mrf.mxu1 }
 0x209   :  { %1207 = vst.msk [vmem:[%s2421_s5 + $0x1e0] sm:$0xff] %vm1146_vm2, %v1128_v18  ;;  %v1143_v20 = vadd.f32 %v1652_v19, %v2094_v21 }
 0x20a   :  { %v1137_v22 = vpop.f32.mrf.mxu1 }
 0x20b   :  { %1210 = vst.msk [vmem:[%s2421_s5 + $0x1f8] sm:$0xff] %vm1146_vm2, %v1143_v20  ;;  %v1138_v23 = vadd.f32 %v2094_v21, %v1137_v22 }
 0x20d   :  { %1209 = vst.msk [vmem:[%s2421_s5 + $0x1f0] sm:$0xff] %vm1146_vm2, %v1138_v23 }

</bundles_post_ra>
